<compile_context>
chip_gen: v7x
topology: tpu7x:2x2x1
jax: 0.10.0
libtpu: 0.0.40
codegen_flags: <defaults>
</compile_context>

<pallas_src>
import jax
import jax.numpy as jnp
from jax.experimental import pallas as pl
from jax.experimental.pallas import tpu as pltpu


def _decoder_kernel(z_ref, w_ref, x_ref, x1_ref, wrelu_ref):
    """One grid step: (tile_b, K) z-tile  x  (K, tile_d) weight tile.

    Grid = (num_d_tiles, num_b_tiles); program_id(0)=j (D tile, outer, parallel),
    program_id(1)=i (batch tile, inner, arbitrary).

    z_ref    : (tile_b, K)       VMEM in
    w_ref    : (K, tile_d)       VMEM in   (raw weight tile)
    x_ref    : (tile_b, tile_d)  VMEM out  -> z @ relu(W)
    x1_ref   : (tile_b, tile_d)  VMEM out  -> outer(z[:, 0], relu(W[0, :]))
    wrelu_ref: (K, tile_d)       VMEM scratch holding relu(W tile)
    """
    # The weight tile only changes when the outer D index changes, i.e. exactly
    # when the inner batch index wraps to 0 -> hoist the ReLU out of the batch loop.
    @pl.when(pl.program_id(1) == 0)
    def _():
        wrelu_ref[...] = jnp.maximum(w_ref[...], 0.0)  # scalar-imm max, no zeros broadcast

    w = wrelu_ref[...]
    z = z_ref[...]

    # Hot path: MXU matmul with f32 accumulation, lane-dense (>=128 wide) store.
    x_ref[...] = jnp.dot(z, w, preferred_element_type=jnp.float32).astype(x_ref.dtype)

    # Rank-1 reconstruction from the first latent component (broadcast outer product, VPU).
    x1_ref[...] = (z[:, 0:1] * w[0:1, :]).astype(x1_ref.dtype)


def _pick_tile(dim, candidates):
    """Largest aligned candidate that evenly divides `dim`; fall back to full extent."""
    for c in candidates:
        if c <= dim and dim % c == 0:
            return c
    return dim  # full extent is always a legal block size


def decoder_forward(z, components, *, tile_b=None, tile_d=None):
    """Pallas implementation of Decoder.forward.

    z:          (B, n_components) float32
    components: (n_components, out_dim) float32
    returns (X_recon, X_recon_from_z1), each (B, out_dim) float32
    """
    B, K = z.shape
    K2, D = components.shape
    assert K == K2, "z and components_ inner dims must match"

    # MXU/VPU-aligned tile choices (multiples of 8 on sublanes, 128 on lanes),
    # capped so (z + W + 2 outputs, double-buffered, + relu(W) scratch) stays
    # well under the 16 MiB scoped-VMEM default (v5e) / 64 MiB physical (v7x).
    if tile_b is None:
        tile_b = _pick_tile(B, (512, 256, 128, 64, 32, 16, 8))
    if tile_d is None:
        tile_d = _pick_tile(D, (2048, 1024, 512, 256, 128))

    assert B % tile_b == 0 and D % tile_d == 0, "tiles must evenly divide (B, D)"
    assert tile_b == B or tile_b % 8 == 0, "tile_b must be a multiple of 8 (or the full batch)"
    assert tile_d == D or tile_d % 128 == 0, "tile_d must be a multiple of 128 (or the full out_dim)"

    num_b = B // tile_b
    num_d = D // tile_d

    # Explicit VMEM budget (bytes): double-buffered z/W/outputs + relu(W) scratch,
    # with 2x headroom, clamped to a range that is safe on v5e/v6e/v7x.
    itemsize = 4
    vmem_est = (
        2 * tile_b * K             # z tile, double-buffered
        + 2 * K * tile_d           # weight tile, double-buffered
        + 2 * 2 * tile_b * tile_d  # two output tiles, double-buffered
        + K * tile_d               # relu(W) scratch
    ) * itemsize
    vmem_limit = int(min(max(2 * vmem_est, 16 * 1024 * 1024), 48 * 1024 * 1024))

    out_shapes = (
        jax.ShapeDtypeStruct((B, D), jnp.float32),
        jax.ShapeDtypeStruct((B, D), jnp.float32),
    )

    return pl.pallas_call(
        _decoder_kernel,
        out_shape=out_shapes,
        grid_spec=pltpu.PrefetchScalarGridSpec(
            num_scalar_prefetch=0,
            grid=(num_d, num_b),  # (j = D tile, i = batch tile)
            in_specs=[
                pl.BlockSpec((tile_b, K), lambda j, i: (i, 0)),      # z batch tile
                pl.BlockSpec((K, tile_d), lambda j, i: (0, j)),      # weight D tile (invariant in i)
            ],
            out_specs=[
                pl.BlockSpec((tile_b, tile_d), lambda j, i: (i, j)),  # X_recon
                pl.BlockSpec((tile_b, tile_d), lambda j, i: (i, j)),  # X_recon_from_z1
            ],
            scratch_shapes=[
                pltpu.VMEM((K, tile_d), jnp.float32),  # relu(W tile), reused across batch tiles
            ],
        ),
        compiler_params=pltpu.CompilerParams(
            # D axis parallel (megacore shardable on v7x when num_d >= 2);
            # batch axis arbitrary so the relu(W) scratch reuse stays sequential.
            dimension_semantics=("parallel", "arbitrary"),
            vmem_limit_bytes=vmem_limit,
        ),
    )(z, components)


def decoder_reference(z, components):
    w = jnp.maximum(components, 0.0)
    x = z @ w
    x1 = z[:, 0:1] @ w[0:1, :]
    return x, x1


if __name__ == "__main__":
    key = jax.random.PRNGKey(0)
    k_z, k_w, k_z2, k_w2 = jax.random.split(key, 4)

    # Small shapes consistent with the module: batch=8, n_components=16, out_dim=128.
    B, K, D = 8, 16, 128
    components_ = jax.random.normal(k_w, (K, D), dtype=jnp.float32)
    z = jax.random.normal(k_z, (B, K), dtype=jnp.float32)

    x_recon, x_recon_z1 = decoder_forward(z, components_)
    jax.block_until_ready((x_recon, x_recon_z1))

    x_ref, x1_ref = decoder_reference(z, components_)
    assert jnp.allclose(x_recon, x_ref, atol=1e-4, rtol=1e-4)
    assert jnp.allclose(x_recon_z1, x1_ref, atol=1e-4, rtol=1e-4)

    # Second check with explicit tiles so the 2x2 grid path (scratch re-init on
    # inner index wrap, D tiling, weight-tile reuse) is exercised.
    B2, D2 = 16, 256
    components2 = jax.random.normal(k_w2, (K, D2), dtype=jnp.float32)
    z2 = jax.random.normal(k_z2, (B2, K), dtype=jnp.float32)

    x2, x2_z1 = decoder_forward(z2, components2, tile_b=8, tile_d=128)
    jax.block_until_ready((x2, x2_z1))

    x2_ref, x2_z1_ref = decoder_reference(z2, components2)
    assert jnp.allclose(x2, x2_ref, atol=1e-4, rtol=1e-4)
    assert jnp.allclose(x2_z1, x2_z1_ref, atol=1e-4, rtol=1e-4)

    print("KERNEL_OK")
</pallas_src>

<mosaic_0001>
module attributes {stable_mosaic.version = 11 : i64} {
  func.func @_decoder_kernel(%arg0: i32, %arg1: i32, %arg2: memref<8x16xf32, #tpu.memory_space<vmem>>, %arg3: memref<16x128xf32, #tpu.memory_space<vmem>>, %arg4: memref<8x128xf32, #tpu.memory_space<vmem>>, %arg5: memref<8x128xf32, #tpu.memory_space<vmem>>, %arg6: memref<16x128xf32, #tpu.memory_space<vmem>>) attributes {dimension_semantics = [#tpu.dimension_semantics<parallel>, #tpu.dimension_semantics<arbitrary>], iteration_bounds = array<i64: 1, 1>, scalar_prefetch = 0 : i64, scratch_operands = 1 : i64, tpu.core_type = #tpu.core_type<tc>, window_params = [{transform_indices = @transform_0, window_bounds = array<i64: 8, 16>}, {transform_indices = @transform_1, window_bounds = array<i64: 16, 128>}, {transform_indices = @transform_2, window_bounds = array<i64: 8, 128>}, {transform_indices = @transform_3, window_bounds = array<i64: 8, 128>}]} {
    %c0_i32 = arith.constant 0 : i32
    %0 = arith.cmpi eq, %arg1, %c0_i32 : i32
    %1 = arith.extui %0 : i1 to i32
    %c0_i32_0 = arith.constant 0 : i32
    %2 = arith.cmpi ne, %1, %c0_i32_0 : i32
    scf.if %2 {
      %c0_8 = arith.constant 0 : index
      %c0_9 = arith.constant 0 : index
      %13 = vector.load %arg3[%c0_8, %c0_9] : memref<16x128xf32, #tpu.memory_space<vmem>>, vector<16x128xf32>
      %cst_10 = arith.constant 0.000000e+00 : f32
      %14 = vector.broadcast %cst_10 : f32 to vector<16x128xf32>
      %15 = arith.maximumf %13, %14 : vector<16x128xf32>
      %c0_11 = arith.constant 0 : index
      %c0_12 = arith.constant 0 : index
      %16 = vector.load %arg6[%c0_11, %c0_12] : memref<16x128xf32, #tpu.memory_space<vmem>>, vector<16x128xf32>
      tpu.vector_store %arg6[%c0_11, %c0_12], %15 {strides = array<i32>} : memref<16x128xf32, #tpu.memory_space<vmem>>, vector<16x128xf32>,
    } else {
    }
    %c0 = arith.constant 0 : index
    %c0_1 = arith.constant 0 : index
    %3 = vector.load %arg6[%c0, %c0_1] : memref<16x128xf32, #tpu.memory_space<vmem>>, vector<16x128xf32>
    %c0_2 = arith.constant 0 : index
    %c0_3 = arith.constant 0 : index
    %4 = vector.load %arg2[%c0_2, %c0_3] : memref<8x16xf32, #tpu.memory_space<vmem>>, vector<8x16xf32>
    %cst = arith.constant dense<0.000000e+00> : vector<8x128xf32>
    %5 = tpu.matmul %4, %3, %cst {dimension_numbers = #tpu.dot_dimension_numbers<[1], [0], [0], [1], [0, 0, 1, 1], [], []>} : vector<8x16xf32>, vector<16x128xf32>, vector<8x128xf32> -> vector<8x128xf32>
    %c0_4 = arith.constant 0 : index
    %c0_5 = arith.constant 0 : index
    %6 = vector.load %arg4[%c0_4, %c0_5] : memref<8x128xf32, #tpu.memory_space<vmem>>, vector<8x128xf32>
    tpu.vector_store %arg4[%c0_4, %c0_5], %5 {strides = array<i32>} : memref<8x128xf32, #tpu.memory_space<vmem>>, vector<8x128xf32>,
    %7 = vector.extract_strided_slice %4 {offsets = [0, 0], sizes = [8, 1], strides = [1, 1]} : vector<8x16xf32> to vector<8x1xf32>
    %8 = vector.extract_strided_slice %3 {offsets = [0, 0], sizes = [1, 128], strides = [1, 1]} : vector<16x128xf32> to vector<1x128xf32>
    %9 = vector.broadcast %7 : vector<8x1xf32> to vector<8x128xf32>
    %10 = vector.broadcast %8 : vector<1x128xf32> to vector<8x128xf32>
    %11 = arith.mulf %9, %10 : vector<8x128xf32>
    %c0_6 = arith.constant 0 : index
    %c0_7 = arith.constant 0 : index
    %12 = vector.load %arg5[%c0_6, %c0_7] : memref<8x128xf32, #tpu.memory_space<vmem>>, vector<8x128xf32>
    tpu.vector_store %arg5[%c0_6, %c0_7], %11 {strides = array<i32>} : memref<8x128xf32, #tpu.memory_space<vmem>>, vector<8x128xf32>,
    return
  }
  func.func @transform_0(%arg0: i32, %arg1: i32) -> (i32, i32) {
    %c0_i32 = arith.constant 0 : i32
    %c0_i32_0 = arith.constant 0 : i32
    return %arg1, %c0_i32 : i32, i32
  }
  func.func @transform_1(%arg0: i32, %arg1: i32) -> (i32, i32) {
    %c0_i32 = arith.constant 0 : i32
    %c0_i32_0 = arith.constant 0 : i32
    return %c0_i32, %arg0 : i32, i32
  }
  func.func @transform_2(%arg0: i32, %arg1: i32) -> (i32, i32) {
    %c0_i32 = arith.constant 0 : i32
    return %arg1, %arg0 : i32, i32
  }
  func.func @transform_3(%arg0: i32, %arg1: i32) -> (i32, i32) {
    %c0_i32 = arith.constant 0 : i32
    return %arg1, %arg0 : i32, i32
  }
}

</mosaic_0001>

<bundles_post_ra>
// kernel: tpu_custom_call.1
= control target key start
LH: loop header
LB: loop body
LE: loop exit
PB: predicated region body
PF: predicated region fallthrough
CT: control target
= control target key end

     0   :  { %9 = vsyncpa [#allocation4], 0  ;;  %s375_s0 = inlined_call_operand.hbm [shape: f32[8,16], index: 0, kind: input, shape index: {}]   ;;  %s376_s1 = inlined_call_operand.hbm [shape: f32[16,128], index: 1, kind: input, shape index: {}]   ;;  %s377_s2 = inlined_call_operand.hbm [shape: f32[8,128], index: 2, kind: output, shape index: {0}]   ;;  %s378_s3 = inlined_call_operand.hbm [shape: f32[8,128], index: 3, kind: output, shape index: {1}]  }
   0x1   :  { %10 = vsyncpa [#allocation7], 0 }
   0x2   :  { %11 = vsyncpa [#allocation5], 0 }
   0x3   :  { %12 = vsyncpa [#allocation10], 0  ;;  %s290_s12 = smov [#allocation3]   ;;  %s291_s14 = smov [#allocation6]  }
   0x4   :  { %s19_s13 = sshll.u32 %s290_s12, 4  ;;  %s28_s15 = sshll.u32 %s291_s14, 4  ;;  %s20_s13 = int_to_ptr.vmem [resolvable:$true] %s19_s13  ;;  %s320_s15 = int_to_ptr.vmem [resolvable:$true] %s28_s15 }
   0x5   :  { %s194_s18 = scalar_lea.hbm %s375_s0, 128 }
   0x6   :  { %p195_p0 = scmp.ne.s32.totalorder %s375_s0, %s194_s18  ;;  %p198_p1 = scmp.lt.u32.totalorder %s194_s18, %s375_s0 }
   0x8   :  { %p200_p2 = pnand %p198_p1, %p195_p0 }
   0xa   :  { %203 = shalt.err (!%p200_p2)
}
   0xb   :  { %s204_s23 = scalar_lea.vmem %s20_s13, 128  ;;  %p209_p4 = scmp.lt.s32.totalorder %s20_s13, %s20_s13 }
   0xc   :  { %p205_p3 = scmp.ne.s32.totalorder %s20_s13, %s204_s23  ;;  %p210_p5 = scmp.lt.s32.totalorder %s204_s23, %s204_s23 }
   0xe   :  { %p211_p6 = por %p210_p5, %p209_p4 }
  0x10   :  { %p212_p7 = pnand %p211_p6, %p205_p3 }
  0x12   :  { %215 = shalt.err (!%p212_p7)
}
  0x13   :  { %22 = dma.hbm_to_vmem [thread:$0]  %s375_s0, 128, %s20_s13, [#allocation4]  }
  0x14   :  { %s216_s28 = scalar_lea.hbm %s376_s1, 256 }
  0x15   :  { %p217_p8 = scmp.ne.s32.totalorder %s376_s1, %s216_s28  ;;  %p220_p9 = scmp.lt.u32.totalorder %s216_s28, %s376_s1 }
  0x17   :  { %p222_p10 = pnand %p220_p9, %p217_p8 }
  0x19   :  { %225 = shalt.err (!%p222_p10)
}
  0x1a   :  { %s226_s6 = scalar_lea.vmem %s320_s15, 256  ;;  %p231_p12 = scmp.lt.s32.totalorder %s320_s15, %s320_s15 }
  0x1b   :  { %p227_p11 = scmp.ne.s32.totalorder %s320_s15, %s226_s6  ;;  %p232_p13 = scmp.lt.s32.totalorder %s226_s6, %s226_s6 }
  0x1d   :  { %p233_p0 = por %p232_p13, %p231_p12 }
  0x1f   :  { %p234_p1 = pnand %p233_p0, %p227_p11 }
  0x21   :  { %237 = shalt.err (!%p234_p1)
}
  0x22   :  { %s292_s0 = smov 128   ;;  %s293_s7 = smov 8  }
  0x23   :  { %34 = dma.hbm_to_vmem [thread:$0]  %s376_s1, 256, %s320_s15, [#allocation7], %s292_s0, %s292_s0, %s293_s7  }
  0x24   :  { %282 = dma.done.wait [#allocation4], 128  }
  0x25   :  { %283 = vsyncadd [#allocation4], 4294967168 }
  0x26   :  { %284 = dma.done.wait [#allocation7], 256  }
  0x27   :  { %285 = vsyncadd [#allocation7], 4294967040  ;;  %v294_v0 = vmov 0.0|0.0   ;;  %vm295_vm0 = vmmov 0   ;;  %v296_v1 = vmov 0.0   ;;  %v297_v2 = vmov 0  }
  0x28   :  { %180 = vmatprep.subr.bf16.mxu0 %v294_v0  ;;  %177 = vmatprep.mubr.msk.f32.mxu0 %vm295_vm0, %v296_v1  ;;  %v45_v3 = vld [vmem:[#allocation6] sm:$0xff]  ;;  %v46_v4 = vld [vmem:[#allocation6 + $0x8] sm:$0xff]  ;;  %v53_v5 = vld [vmem:[#allocation3] sm:$0xff]  ;;  %vm54_vm1 = vcmask 130048   ;;  %v133_v9 = vlaneseq  ;;  %s298_s1 = smov [#allocation9]  }
  0x29   :  { %193 = vset.pattern.permute.xlu0 %v297_v2  ;;  %v47_v6 = vmax.f32 %v45_v3, 0.0  ;;  %v48_v7 = vmax.f32 %v46_v4, 0.0  ;;  %s155_s10 = sshll.u32 %s298_s1, 4  ;;  %s156_s10 = int_to_ptr.vmem [resolvable:$true] %s155_s10 }
  0x2a   :  { %130 = vperm.xlu0 %193, %v53_v5   ;;  %v134_v10 = vshrl.u32 %v133_v9, 7  ;;  %s238_s11 = scalar_lea.vmem %s156_s10, 128  ;;  %p243_p3 = scmp.lt.s32.totalorder %s156_s10, %s156_s10 }
  0x2b   :  { %v181_v8 = vpack.c.bf16 %v48_v7, %v47_v6  ;;  %p239_p2 = scmp.ne.s32.totalorder %s156_s10, %s238_s11  ;;  %p244_p4 = scmp.lt.s32.totalorder %s238_s11, %s238_s11 }
  0x2c   :  { %v135_v11 = vsub.s32 0, %v134_v10 }
  0x2d   :  { %182 = vmatpush3.bf16.msra.mxu0 %v181_v8  ;;  %p245_p5 = por %p244_p4, %p243_p3 }
  0x2e   :  { %v136_v12 = vrot.slane %v47_v6, %v135_v11 }
  0x2f   :  { %p246_p6 = pnand %p245_p5, %p239_p2 }
  0x30   :  { %178 = vmatmul.mubr.msk.f32.vlgmr.msra.gmra.mrb[0].mxu0 %vm54_vm1, %v53_v5 }
  0xa9   :  { %v131_v13 = vpop.permute.xlu0 %130 }
  0xaa   :  { %v137_v14 = vmul.f32 %v136_v12, %v131_v13 }
  0xac   :  { %138 = vst [vmem:[#allocation9] sm:$0xff] %v137_v14 }
  0xad   :  { %249 = shalt.err (!%p246_p6)
}
  0xae   :  { %s250_s14 = scalar_lea.hbm %s378_s3, 128 }
  0xaf   :  { %p251_p7 = scmp.ne.s32.totalorder %s378_s3, %s250_s14  ;;  %p254_p8 = scmp.lt.u32.totalorder %s250_s14, %s378_s3 }
  0xb1   :  { %p256_p9 = pnand %p254_p8, %p251_p7 }
  0xb3   :  { %259 = shalt.err (!%p256_p9)
}
  0xb4   :  { %158 = dma.vmem_to_hbm [thread:$0]  %s156_s10, 128, %s378_s3, [#allocation10]  }
  0xb5   :  { %s299_s21 = smov [#allocation8]  }
  0xb6   :  { %s145_s22 = sshll.u32 %s299_s21, 4  ;;  %s146_s22 = int_to_ptr.vmem [resolvable:$true] %s145_s22 }
  0xb7   :  { %s260_s23 = scalar_lea.vmem %s146_s22, 128  ;;  %p265_p11 = scmp.lt.s32.totalorder %s146_s22, %s146_s22 }
  0xb8   :  { %p261_p10 = scmp.ne.s32.totalorder %s146_s22, %s260_s23  ;;  %p266_p12 = scmp.lt.s32.totalorder %s260_s23, %s260_s23 }
  0xba   :  { %p267_p13 = por %p266_p12, %p265_p11 }
  0xbc   :  { %p268_p0 = pnand %p267_p13, %p261_p10 }
 0x103   :  { %v124_v15 = vpop.f32.mrb[0].mxu0 }
 0x104   :  { %128 = vst [vmem:[#allocation8] sm:$0xff] %v124_v15  ;;  %v179_v16 = vpop.f32.mrb[1].mxu0 }
 0x105   :  { %271 = shalt.err (!%p268_p0)
}
 0x106   :  { %s272_s26 = scalar_lea.hbm %s377_s2, 128 }
 0x107   :  { %p273_p1 = scmp.ne.s32.totalorder %s377_s2, %s272_s26  ;;  %p276_p2 = scmp.lt.u32.totalorder %s272_s26, %s377_s2 }
 0x109   :  { %p278_p3 = pnand %p276_p2, %p273_p1 }
 0x10b   :  { %281 = shalt.err (!%p278_p3)
}
 0x10c   :  { %148 = dma.vmem_to_hbm [thread:$0]  %s146_s22, 128, %s377_s2, [#allocation5]  }
 0x10d   :  { %286 = dma.done.wait [#allocation5], 128  }
 0x10e   :  { %287 = vsyncadd [#allocation5], 4294967168 }
 0x10f   :  { %288 = dma.done.wait [#allocation10], 128  }
 0x110   :  { %289 = vsyncadd [#allocation10], 4294967168 }
 0x111   :  { %165 = vsyncpa [#allocation4], 1 }
 0x112   :  { %166 = vsyncpa [#allocation7], 1 }
 0x113   :  { %167 = vsyncpa [#allocation5], 1 }
 0x114   :  { %168 = vsyncpa [#allocation10], 1 }

</bundles_post_ra>
